<compile_context>
chip_gen: v5e
topology: v5e:2x2
jax: 0.10.0
libtpu: 0.0.40
codegen_flags: <defaults>
</compile_context>

<pallas_src>
import functools

import jax
import jax.numpy as jnp
from jax.experimental import pallas as pl
from jax.experimental.pallas import tpu as pltpu


def _round_up(x, m):
    return (x + m - 1) // m * m


def _qnet_kernel(x_ref, w1_ref, b1_ref, w2_ref, b2_ref, q_ref):
    # Fused: matmul -> bias -> ReLU -> matmul -> bias, all resident in VMEM.
    x = x_ref[...].astype(jnp.bfloat16)                       # [TB, S_pad]
    h = jnp.dot(x, w1_ref[...], preferred_element_type=jnp.float32)
    h = jnp.maximum(h + b1_ref[...], 0.0)                     # f32 epilogue
    q = jnp.dot(h.astype(jnp.bfloat16), w2_ref[...],
                preferred_element_type=jnp.float32)
    q_ref[...] = (q + b2_ref[...]).astype(q_ref.dtype)        # lane-dense store


def qnet_forward(state, params, action_size, *, block_b=256):
    """Batch-tiled fused MLP forward.  Returns [B, action_size] f32 Q-values."""
    w1, b1, w2, b2 = params                  # padded: bf16 weights, f32 biases
    B, S = state.shape
    S_pad, H_pad = w1.shape
    A_pad = w2.shape[1]

    # Batch tile: multiple of 8 (sublane), capped at block_b.  Each streamed
    # tile is double-buffered; with TB=256 that is well under a 32 MiB scoped
    # VMEM budget (and v7x's 64 MiB physical VMEM).
    TB = min(block_b, _round_up(B, 8))
    B_pad = _round_up(B, TB)

    x = state.astype(jnp.float32)
    if (B_pad, S_pad) != (B, S):
        x = jnp.pad(x, ((0, B_pad - B), (0, S_pad - S)))

    out = pl.pallas_call(
        _qnet_kernel,
        out_shape=jax.ShapeDtypeStruct((B_pad, A_pad), jnp.float32),
        grid=(B_pad // TB,),
        in_specs=[
            pl.BlockSpec((TB, S_pad), lambda i: (i, 0)),      # streamed state
            pl.BlockSpec((S_pad, H_pad), lambda i: (0, 0)),   # resident weight
            pl.BlockSpec((1, H_pad), lambda i: (0, 0)),       # resident bias
            pl.BlockSpec((H_pad, A_pad), lambda i: (0, 0)),   # resident weight
            pl.BlockSpec((1, A_pad), lambda i: (0, 0)),       # resident bias
        ],
        out_specs=pl.BlockSpec((TB, A_pad), lambda i: (i, 0)),
        compiler_params=pltpu.CompilerParams(
            dimension_semantics=("parallel",),                # shard over TCs
            vmem_limit_bytes=32 * 1024 * 1024,
        ),
    )(x, w1, b1, w2, b2)

    return out[:B, :action_size]


def init_params(key, state_size, hidden_size, action_size):
    """Deterministic nn.Linear-style init, zero-padded once to TPU-friendly
    shapes (S -> mult of 8, H/A -> mult of 128); weights stored in bf16."""
    k1, k2, k3, k4 = jax.random.split(key, 4)
    s1 = 1.0 / jnp.sqrt(state_size)
    s2 = 1.0 / jnp.sqrt(hidden_size)
    w1 = jax.random.uniform(k1, (state_size, hidden_size), jnp.float32, -s1, s1)
    b1 = jax.random.uniform(k2, (hidden_size,), jnp.float32, -s1, s1)
    w2 = jax.random.uniform(k3, (hidden_size, action_size), jnp.float32, -s2, s2)
    b2 = jax.random.uniform(k4, (action_size,), jnp.float32, -s2, s2)

    S_pad = _round_up(state_size, 8)
    H_pad = _round_up(hidden_size, 128)
    A_pad = _round_up(action_size, 128)

    w1p = jnp.zeros((S_pad, H_pad), jnp.float32)
    w1p = w1p.at[:state_size, :hidden_size].set(w1)
    b1p = jnp.zeros((1, H_pad), jnp.float32).at[0, :hidden_size].set(b1)
    w2p = jnp.zeros((H_pad, A_pad), jnp.float32)
    w2p = w2p.at[:hidden_size, :action_size].set(w2)
    b2p = jnp.zeros((1, A_pad), jnp.float32).at[0, :action_size].set(b2)

    return (w1p.astype(jnp.bfloat16), b1p, w2p.astype(jnp.bfloat16), b2p)


def qnet_reference(state, params, action_size):
    """Pure-JAX reference matching the kernel's bf16-operand / f32-accum math."""
    w1, b1, w2, b2 = params
    B, S = state.shape
    S_pad = w1.shape[0]
    x = jnp.pad(state.astype(jnp.float32), ((0, 0), (0, S_pad - S)))
    x = x.astype(jnp.bfloat16).astype(jnp.float32)
    h = jnp.maximum(x @ w1.astype(jnp.float32) + b1, 0.0)
    h = h.astype(jnp.bfloat16).astype(jnp.float32)
    q = h @ w2.astype(jnp.float32) + b2
    return q[:, :action_size]


if __name__ == "__main__":
    state_size, hidden_size, action_size = 16, 32, 4

    key = jax.random.PRNGKey(0)
    k_state, k_big, k_params = jax.random.split(key, 3)
    params = init_params(k_params, state_size, hidden_size, action_size)

    fwd = jax.jit(functools.partial(qnet_forward, action_size=action_size))

    # Small per-environment-step inference batch.
    state = jax.random.normal(k_state, (8, state_size), jnp.float32)
    q = jax.block_until_ready(fwd(state, params))
    assert q.shape == (8, action_size)
    assert jnp.allclose(q, qnet_reference(state, params, action_size),
                        atol=1e-2, rtol=1e-2)

    # Training-sized batch (not a multiple of the batch tile): exercises the
    # wrapper padding and the multi-step parallel grid with resident weights.
    big = jax.random.normal(k_big, (300, state_size), jnp.float32)
    qb = jax.block_until_ready(fwd(big, params))
    assert qb.shape == (300, action_size)
    assert jnp.allclose(qb, qnet_reference(big, params, action_size),
                        atol=1e-2, rtol=1e-2)

    print("KERNEL_OK")
</pallas_src>

<mosaic_0001>
module attributes {stable_mosaic.version = 11 : i64} {
  func.func @_qnet_kernel(%arg0: i32, %arg1: memref<8x16xf32, #tpu.memory_space<vmem>>, %arg2: memref<16x128xbf16, #tpu.memory_space<vmem>>, %arg3: memref<1x128xf32, #tpu.memory_space<vmem>>, %arg4: memref<128x128xbf16, #tpu.memory_space<vmem>>, %arg5: memref<1x128xf32, #tpu.memory_space<vmem>>, %arg6: memref<8x128xf32, #tpu.memory_space<vmem>>) attributes {dimension_semantics = [#tpu.dimension_semantics<parallel>], iteration_bounds = array<i64: 1>, scalar_prefetch = 0 : i64, scratch_operands = 0 : i64, tpu.core_type = #tpu.core_type<tc>, window_params = [{transform_indices = @transform_0, window_bounds = array<i64: 8, 16>}, {pipeline_mode = #tpu.pipeline_mode<synchronous>, transform_indices = @transform_1, window_bounds = array<i64: 16, 128>}, {pipeline_mode = #tpu.pipeline_mode<synchronous>, transform_indices = @transform_2, window_bounds = array<i64: 1, 128>}, {pipeline_mode = #tpu.pipeline_mode<synchronous>, transform_indices = @transform_3, window_bounds = array<i64: 128, 128>}, {pipeline_mode = #tpu.pipeline_mode<synchronous>, transform_indices = @transform_4, window_bounds = array<i64: 1, 128>}, {transform_indices = @transform_5, window_bounds = array<i64: 8, 128>}]} {
    %c0 = arith.constant 0 : index
    %c0_0 = arith.constant 0 : index
    %0 = vector.load %arg1[%c0, %c0_0] : memref<8x16xf32, #tpu.memory_space<vmem>>, vector<8x16xf32>
    %1 = arith.truncf %0 : vector<8x16xf32> to vector<8x16xbf16>
    %c0_1 = arith.constant 0 : index
    %c0_2 = arith.constant 0 : index
    %2 = vector.load %arg2[%c0_1, %c0_2] : memref<16x128xbf16, #tpu.memory_space<vmem>>, vector<16x128xbf16>
    %cst = arith.constant dense<0.000000e+00> : vector<8x128xf32>
    %3 = tpu.matmul %1, %2, %cst {dimension_numbers = #tpu.dot_dimension_numbers<[1], [0], [0], [1], [0, 0, 1, 1], [], []>} : vector<8x16xbf16>, vector<16x128xbf16>, vector<8x128xf32> -> vector<8x128xf32>
    %c0_3 = arith.constant 0 : index
    %c0_4 = arith.constant 0 : index
    %4 = vector.load %arg3[%c0_3, %c0_4] : memref<1x128xf32, #tpu.memory_space<vmem>>, vector<1x128xf32>
    %5 = vector.broadcast %4 : vector<1x128xf32> to vector<8x128xf32>
    %6 = arith.addf %3, %5 : vector<8x128xf32>
    %cst_5 = arith.constant 0.000000e+00 : f32
    %7 = vector.broadcast %cst_5 : f32 to vector<8x128xf32>
    %8 = arith.maximumf %6, %7 : vector<8x128xf32>
    %9 = arith.truncf %8 : vector<8x128xf32> to vector<8x128xbf16>
    %c0_6 = arith.constant 0 : index
    %c0_7 = arith.constant 0 : index
    %10 = vector.load %arg4[%c0_6, %c0_7] : memref<128x128xbf16, #tpu.memory_space<vmem>>, vector<128x128xbf16>
    %cst_8 = arith.constant dense<0.000000e+00> : vector<8x128xf32>
    %11 = tpu.matmul %9, %10, %cst_8 {dimension_numbers = #tpu.dot_dimension_numbers<[1], [0], [0], [1], [0, 0, 1, 1], [], []>} : vector<8x128xbf16>, vector<128x128xbf16>, vector<8x128xf32> -> vector<8x128xf32>
    %c0_9 = arith.constant 0 : index
    %c0_10 = arith.constant 0 : index
    %12 = vector.load %arg5[%c0_9, %c0_10] : memref<1x128xf32, #tpu.memory_space<vmem>>, vector<1x128xf32>
    %13 = vector.broadcast %12 : vector<1x128xf32> to vector<8x128xf32>
    %14 = arith.addf %11, %13 : vector<8x128xf32>
    %c0_11 = arith.constant 0 : index
    %c0_12 = arith.constant 0 : index
    %15 = vector.load %arg6[%c0_11, %c0_12] : memref<8x128xf32, #tpu.memory_space<vmem>>, vector<8x128xf32>
    tpu.vector_store %arg6[%c0_11, %c0_12], %14 {strides = array<i32>} : memref<8x128xf32, #tpu.memory_space<vmem>>, vector<8x128xf32>,
    return
  }
  func.func @transform_0(%arg0: i32) -> (i32, i32) {
    %c0_i32 = arith.constant 0 : i32
    %c0_i32_0 = arith.constant 0 : i32
    return %arg0, %c0_i32 : i32, i32
  }
  func.func @transform_1(%arg0: i32) -> (i32, i32) {
    %c0_i32 = arith.constant 0 : i32
    %c0_i32_0 = arith.constant 0 : i32
    %c0_i32_1 = arith.constant 0 : i32
    return %c0_i32, %c0_i32_0 : i32, i32
  }
  func.func @transform_2(%arg0: i32) -> (i32, i32) {
    %c0_i32 = arith.constant 0 : i32
    %c0_i32_0 = arith.constant 0 : i32
    %c0_i32_1 = arith.constant 0 : i32
    return %c0_i32, %c0_i32_0 : i32, i32
  }
  func.func @transform_3(%arg0: i32) -> (i32, i32) {
    %c0_i32 = arith.constant 0 : i32
    %c0_i32_0 = arith.constant 0 : i32
    %c0_i32_1 = arith.constant 0 : i32
    return %c0_i32, %c0_i32_0 : i32, i32
  }
  func.func @transform_4(%arg0: i32) -> (i32, i32) {
    %c0_i32 = arith.constant 0 : i32
    %c0_i32_0 = arith.constant 0 : i32
    %c0_i32_1 = arith.constant 0 : i32
    return %c0_i32, %c0_i32_0 : i32, i32
  }
  func.func @transform_5(%arg0: i32) -> (i32, i32) {
    %c0_i32 = arith.constant 0 : i32
    %c0_i32_0 = arith.constant 0 : i32
    return %arg0, %c0_i32 : i32, i32
  }
}

</mosaic_0001>

<bundles_post_ra>
// kernel: qnet_forward.1
= control target key start
LH: loop header
LB: loop body
LE: loop exit
PB: predicated region body
PF: predicated region fallthrough
CT: control target
= control target key end

     0   :  { %10 = vsyncpa [#allocation3], 0  ;;  %s369_s0 = inlined_call_operand.hbm [shape: f32[8,16], index: 0, kind: input, shape index: {}]   ;;  %s370_s1 = inlined_call_operand.hbm [shape: bf16[16,128], index: 1, kind: input, shape index: {}]   ;;  %s371_s2 = inlined_call_operand.vmem [shape: f32[1,128], index: 2, kind: input, shape index: {}]   ;;  %s372_s3 = inlined_call_operand.hbm [shape: bf16[128,128], index: 3, kind: input, shape index: {}]   ;;  %s373_s4 = inlined_call_operand.vmem [shape: f32[1,128], index: 4, kind: input, shape index: {}]   ;;  %s374_s5 = inlined_call_operand.vmem [shape: f32[8,128], index: 5, kind: output, shape index: {}]  }
   0x1   :  { %11 = vsyncpa [#allocation5], 0  ;;  %s27_s20 = sshll.u32 %s370_s1, 4  ;;  %s316_s21 = smov [#allocation4]   ;;  %s28_s20 = int_to_ptr.hbm [resolvable:$true] %s27_s20 }
   0x2   :  { %s29_s22 = sshll.u32 %s316_s21, 4  ;;  %s17_s25 = sshll.u32 %s369_s0, 4  ;;  %s30_s22 = int_to_ptr.vmem [resolvable:$true] %s29_s22  ;;  %s18_s25 = int_to_ptr.hbm [resolvable:$true] %s17_s25 }
   0x3   :  { %s317_s26 = smov 64   ;;  %s318_s27 = smov 4  }
   0x4   :  { %35 = dma.hbm_to_vmem [thread:$0]  %s28_s20, 128, %s30_s22, [#allocation5], %s317_s26, %s317_s26, %s318_s27  }
   0x5   :  { %s319_s28 = smov [#allocation2]   ;;  %s42_s7 = sshll.u32 %s372_s3, 4  ;;  %s43_s7 = int_to_ptr.hbm [resolvable:$true] %s42_s7 }
   0x6   :  { %s19_s29 = sshll.u32 %s319_s28, 4  ;;  %s320_s1 = smov [#allocation6]   ;;  %s20_s29 = int_to_ptr.vmem [resolvable:$true] %s19_s29 }
   0x7   :  { %22 = dma.hbm_to_vmem [thread:$0]  %s18_s25, 128, %s20_s29, [#allocation3]  }
   0x8   :  { %s44_s8 = sshll.u32 %s320_s1, 4  ;;  %s45_s8 = int_to_ptr.vmem [resolvable:$true] %s44_s8 }
   0x9   :  { %50 = dma.hbm_to_vmem [thread:$0]  %s43_s7, 1024, %s45_s8, [#allocation5], %s317_s26, %s317_s26, %s318_s27  }
   0xa   :  { %312 = dma.done.wait [#allocation3], 128  }
   0xb   :  { %313 = vsyncadd [#allocation3], 4294967168 }
   0xc   :  { %314 = dma.done.wait [#allocation5], 1152  }
   0xd   :  { %315 = vsyncadd [#allocation5], 4294966144  ;;  %v224_v0 = vld [vmem:[#allocation4] sm:$0xff]  ;;  %v66_v1 = vld [vmem:[#allocation2] sm:$0xff]  ;;  %vm80_vm0 = vcmask 130048  }
   0xe   :  { %v232_v2 = vld [vmem:[#allocation6 + $0x38] sm:$0xff]  ;;  %v67_v3 = vpack.c.bf16 %v66_v1, %v66_v1  ;;  %91 = vmatpush.bf16.msra.mxu0 %v224_v0  ;;  %v231_v4 = vld [vmem:[#allocation6 + $0x30] sm:$0xff]  ;;  %v230_v5 = vld [vmem:[#allocation6 + $0x28] sm:$0xff] }
   0xf   :  { %167 = vmatpush.bf16.msra.mxu1 %v232_v2  ;;  %v229_v6 = vld [vmem:[#allocation6 + $0x20] sm:$0xff]  ;;  %v228_v7 = vld [vmem:[#allocation6 + $0x18] sm:$0xff]  ;;  %v227_v8 = vld [vmem:[#allocation6 + $0x10] sm:$0xff] }
  0x10   :  { %v226_v9 = vld [vmem:[#allocation6 + $0x8] sm:$0xff]  ;;  %v225_v10 = vld [vmem:[#allocation6] sm:$0xff]  ;;  %v238_v11 = vld [vmem:[%s371_s2] ss:$0 sm:$0xff] }
  0x11   :  { %191 = vmatmul.msk.bf16.vlgmr.msra.gmra.mxu0 %vm80_vm0, %v67_v3  ;;  %v239_v17 = vld [vmem:[%s373_s4] ss:$0 sm:$0xff] }
  0x13   :  { %168 = vmatpush.bf16.msra.mxu1 %v231_v4 }
  0x17   :  { %169 = vmatpush.bf16.msra.mxu1 %v230_v5 }
  0x1b   :  { %170 = vmatpush.bf16.msra.mxu1 %v229_v6 }
  0x1f   :  { %171 = vmatpush.bf16.msra.mxu1 %v228_v7 }
  0x23   :  { %172 = vmatpush.bf16.msra.mxu1 %v227_v8 }
  0x27   :  { %173 = vmatpush.bf16.msra.mxu1 %v226_v9 }
  0x2b   :  { %174 = vmatpush.bf16.msra.mxu1 %v225_v10 }
  0x8e   :  { %v93_v12 = vpop.f32.mrf.mxu0 }
  0x8f   :  { %v94_v13 = vadd.f32 %v238_v11, %v93_v12 }
  0x91   :  { %v97_v14 = vmax.f32 %v94_v13, 0.0 }
  0x93   :  { %v98_v15 = vpack.c.bf16 %v97_v14, %v97_v14 }
  0x95   :  { %175 = vmatmul.bf16.vlgmr.msra.gmra.mxu1 %v98_v15 }
  0x96   :  { %v95_v16 = vpop.f32.mrf.mxu0 }
 0x112   :  { %v176_v18 = vpop.f32.mrf.mxu1 }
 0x113   :  { %v177_v19 = vadd.f32 %v239_v17, %v176_v18 }
 0x115   :  { %180 = vst [vmem:[%s374_s5] sm:$0xff] %v177_v19 }
 0x11a   :  { %v178_v20 = vpop.f32.mrf.mxu1 }
 0x11b   :  { %185 = vsyncpa [#allocation3], 1 }
 0x11c   :  { %186 = vsyncpa [#allocation5], 1 }

</bundles_post_ra>
